<compile_context>
chip_gen: v7x
topology: tpu7x:2x2x1
jax: 0.10.0
libtpu: 0.0.40
codegen_flags: <defaults>
</compile_context>

<pallas_src>
import functools

import jax
import jax.numpy as jnp
from jax.experimental import pallas as pl
from jax.experimental.pallas import tpu as pltpu

NEG_SLOPE = 0.2  # PyG GATConv default negative_slope


# ---------------------------------------------------------------------------
# Pallas kernel: one full GATConv layer (all heads fused) over the whole graph.
# ---------------------------------------------------------------------------
def gat_layer_kernel(x_ref, w_ref, asrc_ref, adst_ref, bias_ref, adj_ref, out_ref,
                     *, num_heads, head_dim, concat, apply_elu):
    H, C = num_heads, head_dim
    x = x_ref[...]                                    # (N, Fin)
    w = w_ref[...]                                    # (Fin, H*C)
    # One wide MXU matmul covering every head at once (lane-dense output).
    xw = jnp.dot(x, w, preferred_element_type=jnp.float32)        # (N, H*C)

    asrc = asrc_ref[...]                              # (1, H*C)
    adst = adst_ref[...]                              # (1, H*C)
    mask = adj_ref[...] > 0                           # (N, N) bool (adj is bf16 0/1)

    head_outs = []
    for h in range(H):                                # static loop, H <= 4
        lo = h * C
        xw_h = xw[:, lo:lo + C]                       # (N, C) static lane slice
        # Per-node attention logits via lane reductions (VPU/XLU); no xw^T matmul.
        a_dst = jnp.sum(xw_h * adst[:, lo:lo + C], axis=-1, keepdims=True)  # (N, 1)
        a_src = jnp.sum(xw_h * asrc[:, lo:lo + C], axis=-1, keepdims=True)  # (N, 1)
        scores = a_dst + jnp.transpose(a_src)         # (N, N): e[target, source]
        scores = jnp.where(scores > 0, scores, NEG_SLOPE * scores)  # leaky_relu
        scores = jnp.where(mask, scores, -1e30)       # mask non-edges (self loops keep rows finite)

        # Numerically stable row softmax over source nodes.
        scores = scores - jnp.max(scores, axis=-1, keepdims=True)
        p = jnp.exp(scores)
        denom = jnp.sum(p, axis=-1, keepdims=True)
        attn = p * pl.reciprocal(denom, approx=True)  # EUP vrcp, essentially free

        head_outs.append(jnp.dot(attn, xw_h, preferred_element_type=jnp.float32))

    if concat:
        out = head_outs[0] if H == 1 else jnp.concatenate(head_outs, axis=-1)  # (N, H*C)
    else:
        out = head_outs[0]
        for h in range(1, H):
            out = out + head_outs[h]
        out = out * (1.0 / H)                          # mean over heads, (N, C)

    out = out + bias_ref[...]                          # fused bias add
    if apply_elu:                                      # fused inter-layer ELU
        out = jnp.where(out > 0, out, jnp.exp(jnp.minimum(out, 0.0)) - 1.0)
    out_ref[...] = out.astype(out_ref.dtype)


# ---------------------------------------------------------------------------
# One GATConv layer: single pallas_call, no grid (whole small graph resident).
# ---------------------------------------------------------------------------
def gat_conv(x, w_all, att_src, att_dst, bias, adj, *, num_heads, head_dim,
             concat, apply_elu):
    N, Fin = x.shape
    HC = num_heads * head_dim
    out_dim = HC if concat else head_dim

    flops = 2 * N * Fin * HC + num_heads * (2 * N * N * head_dim + 8 * N * N)
    bytes_accessed = (4 * (N * Fin + Fin * HC + 2 * HC + out_dim + N * out_dim)
                      + 2 * N * N)

    kernel = functools.partial(
        gat_layer_kernel, num_heads=num_heads, head_dim=head_dim,
        concat=concat, apply_elu=apply_elu)

    # TODO(synk): for large N, tile the target-node axis with a ("parallel",) grid over
    # row blocks (adj BlockSpec (TM, N)) so v7x's two TensorCores / 64 MiB VMEM are
    # handled; at N=32 everything fits in a single resident block.
    return pl.pallas_call(
        kernel,
        out_shape=jax.ShapeDtypeStruct((N, out_dim), jnp.float32),
        in_specs=[pl.BlockSpec(memory_space=pltpu.MemorySpace.VMEM)] * 6,
        out_specs=pl.BlockSpec(memory_space=pltpu.MemorySpace.VMEM),
        compiler_params=pltpu.CompilerParams(vmem_limit_bytes=32 * 1024 * 1024),
        cost_estimate=pl.CostEstimate(
            flops=flops,
            transcendentals=num_heads * N * N,
            bytes_accessed=bytes_accessed),
    )(x, w_all, att_src, att_dst, bias, adj)


# ---------------------------------------------------------------------------
# Model glue: parameter init and forward pass mirroring the PyTorch GAT module.
# ---------------------------------------------------------------------------
def init_gat_params(key, in_channels, num_classes, num_hidden, attention_head,
                    num_layers):
    feature_list = [in_channels, num_hidden, num_classes]
    for _ in range(num_layers - 2):
        feature_list.insert(-1, num_hidden)
    heads = [1] + list(attention_head)

    params = []
    for i in range(len(feature_list) - 1):
        concat = (i != num_layers - 1)
        fin = feature_list[i] * heads[i]
        c = feature_list[i + 1]
        h = heads[i + 1]
        out_dim = h * c if concat else c
        key, k1, k2, k3, k4 = jax.random.split(key, 5)
        scale = 1.0 / jnp.sqrt(jnp.float32(fin))
        params.append(dict(
            # per-head weights concatenated along the output (lane) axis: (Fin, H*C)
            w=jax.random.normal(k1, (fin, h * c), jnp.float32) * scale,
            att_src=jax.random.normal(k2, (1, h * c), jnp.float32) * 0.1,
            att_dst=jax.random.normal(k3, (1, h * c), jnp.float32) * 0.1,
            bias=jax.random.normal(k4, (1, out_dim), jnp.float32) * 0.01,
            H=h, C=c, concat=concat,
        ))
    return params


def build_adj(edge_index, num_nodes):
    # edge_index: (2, E), row 0 = source, row 1 = target. adj[target, source] = 1.
    src, dst = edge_index[0], edge_index[1]
    adj = jnp.zeros((num_nodes, num_nodes), jnp.float32)
    adj = adj.at[dst, src].set(1.0)
    adj = jnp.minimum(adj + jnp.eye(num_nodes, dtype=jnp.float32), 1.0)  # self loops
    return adj


def gat_forward(params, x, adj):
    # Inference mode: F.dropout / attention dropout are identities.
    adj_bf16 = adj.astype(jnp.bfloat16)  # halves the only O(N^2) operand
    for i, p in enumerate(params):
        x = gat_conv(x, p["w"], p["att_src"], p["att_dst"], p["bias"], adj_bf16,
                     num_heads=p["H"], head_dim=p["C"], concat=p["concat"],
                     apply_elu=(i < len(params) - 1))
    return x


# ---------------------------------------------------------------------------
# Pure-JAX reference (same math, no Pallas) for a correctness check.
# ---------------------------------------------------------------------------
def gat_conv_ref(x, w_all, att_src, att_dst, bias, adj, *, num_heads, head_dim,
                 concat):
    N, Fin = x.shape
    H, C = num_heads, head_dim
    w = w_all.reshape(Fin, H, C)
    xw = jnp.einsum("nf,fhc->hnc", x, w)                        # (H, N, C)
    asrc = jnp.transpose(att_src.reshape(1, H, C), (1, 0, 2))   # (H, 1, C)
    adst = jnp.transpose(att_dst.reshape(1, H, C), (1, 0, 2))   # (H, 1, C)
    a_src = jnp.sum(xw * asrc, axis=-1)                         # (H, N)
    a_dst = jnp.sum(xw * adst, axis=-1)                         # (H, N)
    scores = a_dst[:, :, None] + a_src[:, None, :]              # (H, N, N)
    scores = jnp.where(scores > 0, scores, NEG_SLOPE * scores)
    scores = jnp.where(adj[None] > 0, scores, -1e30)
    attn = jax.nn.softmax(scores, axis=-1)
    out = jnp.einsum("hij,hjc->hic", attn, xw)
    if concat:
        out = jnp.transpose(out, (1, 0, 2)).reshape(N, H * C)
    else:
        out = jnp.mean(out, axis=0)
    return out + bias


def gat_forward_ref(params, x, adj):
    for i, p in enumerate(params):
        x = gat_conv_ref(x, p["w"], p["att_src"], p["att_dst"], p["bias"], adj,
                         num_heads=p["H"], head_dim=p["C"], concat=p["concat"])
        if i < len(params) - 1:
            x = jnp.where(x > 0, x, jnp.exp(jnp.minimum(x, 0.0)) - 1.0)  # ELU
    return x


if __name__ == "__main__":
    key = jax.random.PRNGKey(0)
    N, E = 32, 64
    in_channels, num_hidden, num_classes = 16, 32, 8
    attention_head = [4, 1]
    num_layers = 2

    kx, ke, kp = jax.random.split(key, 3)
    x = jax.random.normal(kx, (N, in_channels), jnp.float32)
    edge_index = jax.random.randint(ke, (2, E), 0, N)
    adj = build_adj(edge_index, N)

    params = init_gat_params(kp, in_channels, num_classes, num_hidden,
                             attention_head, num_layers)

    out = jax.block_until_ready(gat_forward(params, x, adj))
    ref = gat_forward_ref(params, x, adj)

    assert out.shape == (N, num_classes), out.shape
    # approx reciprocal in the kernel's softmax => slightly relaxed tolerance
    assert bool(jnp.allclose(out, ref, atol=5e-3, rtol=5e-3)), "mismatch vs reference"

    print("KERNEL_OK")
</pallas_src>

<mosaic_0001>
module attributes {stable_mosaic.version = 11 : i64} {
  func.func @gat_layer_kernel(%arg0: memref<32x16xf32, #tpu.memory_space<vmem>>, %arg1: memref<16x128xf32, #tpu.memory_space<vmem>>, %arg2: memref<1x128xf32, #tpu.memory_space<vmem>>, %arg3: memref<1x128xf32, #tpu.memory_space<vmem>>, %arg4: memref<1x128xf32, #tpu.memory_space<vmem>>, %arg5: memref<32x32xbf16, #tpu.memory_space<vmem>>, %arg6: memref<32x128xf32, #tpu.memory_space<vmem>>) attributes {dimension_semantics = [], scalar_prefetch = 0 : i64, scratch_operands = 0 : i64, tpu.core_type = #tpu.core_type<tc>} {
    %c0 = arith.constant 0 : index
    %c0_0 = arith.constant 0 : index
    %0 = vector.load %arg0[%c0, %c0_0] : memref<32x16xf32, #tpu.memory_space<vmem>>, vector<32x16xf32>
    %c0_1 = arith.constant 0 : index
    %c0_2 = arith.constant 0 : index
    %1 = vector.load %arg1[%c0_1, %c0_2] : memref<16x128xf32, #tpu.memory_space<vmem>>, vector<16x128xf32>
    %cst = arith.constant dense<0.000000e+00> : vector<32x128xf32>
    %2 = tpu.matmul %0, %1, %cst {dimension_numbers = #tpu.dot_dimension_numbers<[1], [0], [0], [1], [0, 0, 1, 1], [], []>} : vector<32x16xf32>, vector<16x128xf32>, vector<32x128xf32> -> vector<32x128xf32>
    %c0_3 = arith.constant 0 : index
    %c0_4 = arith.constant 0 : index
    %3 = vector.load %arg2[%c0_3, %c0_4] : memref<1x128xf32, #tpu.memory_space<vmem>>, vector<1x128xf32>
    %c0_5 = arith.constant 0 : index
    %c0_6 = arith.constant 0 : index
    %4 = vector.load %arg3[%c0_5, %c0_6] : memref<1x128xf32, #tpu.memory_space<vmem>>, vector<1x128xf32>
    %c0_7 = arith.constant 0 : index
    %c0_8 = arith.constant 0 : index
    %5 = vector.load %arg5[%c0_7, %c0_8] : memref<32x32xbf16, #tpu.memory_space<vmem>>, vector<32x32xbf16>
    %cst_9 = arith.constant 0.000000e+00 : bf16
    %6 = vector.broadcast %cst_9 : bf16 to vector<32x32xbf16>
    %7 = arith.cmpf ogt, %5, %6 : vector<32x32xbf16>
    %8 = vector.extract_strided_slice %2 {offsets = [0, 0], sizes = [32, 32], strides = [1, 1]} : vector<32x128xf32> to vector<32x32xf32>
    %9 = vector.extract_strided_slice %4 {offsets = [0, 0], sizes = [1, 32], strides = [1, 1]} : vector<1x128xf32> to vector<1x32xf32>
    %10 = vector.broadcast %9 : vector<1x32xf32> to vector<32x32xf32>
    %11 = arith.mulf %8, %10 : vector<32x32xf32>
    %cst_10 = arith.constant dense<0.000000e+00> : vector<32xf32>
    %12 = vector.multi_reduction <add>, %11, %cst_10 [1] : vector<32x32xf32> to vector<32xf32>
    %13 = vector.shape_cast %12 : vector<32xf32> to vector<32x1xf32>
    %14 = vector.extract_strided_slice %3 {offsets = [0, 0], sizes = [1, 32], strides = [1, 1]} : vector<1x128xf32> to vector<1x32xf32>
    %15 = vector.broadcast %14 : vector<1x32xf32> to vector<32x32xf32>
    %16 = arith.mulf %8, %15 : vector<32x32xf32>
    %cst_11 = arith.constant dense<0.000000e+00> : vector<32xf32>
    %17 = vector.multi_reduction <add>, %16, %cst_11 [1] : vector<32x32xf32> to vector<32xf32>
    %18 = vector.shape_cast %17 : vector<32xf32> to vector<32x1xf32>
    %19 = tpu.transpose %18, [1, 0] : vector<32x1xf32> -> vector<1x32xf32>
    %20 = vector.broadcast %13 : vector<32x1xf32> to vector<32x32xf32>
    %21 = vector.broadcast %19 : vector<1x32xf32> to vector<32x32xf32>
    %22 = arith.addf %20, %21 : vector<32x32xf32>
    %cst_12 = arith.constant 0.000000e+00 : f32
    %23 = vector.broadcast %cst_12 : f32 to vector<32x32xf32>
    %24 = arith.cmpf ogt, %22, %23 : vector<32x32xf32>
    %cst_13 = arith.constant 2.000000e-01 : f32
    %25 = vector.broadcast %cst_13 : f32 to vector<32x32xf32>
    %26 = arith.mulf %25, %22 : vector<32x32xf32>
    %27 = arith.select %24, %22, %26 : vector<32x32xi1>, vector<32x32xf32>
    %cst_14 = arith.constant -1.000000e+30 : f32
    %28 = vector.broadcast %cst_14 : f32 to vector<32x32xf32>
    %29 = arith.select %7, %27, %28 : vector<32x32xi1>, vector<32x32xf32>
    %cst_15 = arith.constant dense<0xFF800000> : vector<32xf32>
    %30 = vector.multi_reduction <maximumf>, %29, %cst_15 [1] : vector<32x32xf32> to vector<32xf32>
    %31 = vector.shape_cast %30 : vector<32xf32> to vector<32x1xf32>
    %32 = vector.broadcast %31 : vector<32x1xf32> to vector<32x32xf32>
    %33 = arith.subf %29, %32 : vector<32x32xf32>
    %34 = math.exp %33 : vector<32x32xf32>
    %cst_16 = arith.constant dense<0.000000e+00> : vector<32xf32>
    %35 = vector.multi_reduction <add>, %34, %cst_16 [1] : vector<32x32xf32> to vector<32xf32>
    %36 = vector.shape_cast %35 : vector<32xf32> to vector<32x1xf32>
    %37 = tpu.reciprocal %36 {approx = true} : vector<32x1xf32> -> vector<32x1xf32>
    %38 = vector.broadcast %37 : vector<32x1xf32> to vector<32x32xf32>
    %39 = arith.mulf %34, %38 : vector<32x32xf32>
    %cst_17 = arith.constant dense<0.000000e+00> : vector<32x32xf32>
    %40 = tpu.matmul %39, %8, %cst_17 {dimension_numbers = #tpu.dot_dimension_numbers<[1], [0], [0], [1], [0, 0, 1, 1], [], []>} : vector<32x32xf32>, vector<32x32xf32>, vector<32x32xf32> -> vector<32x32xf32>
    %41 = vector.extract_strided_slice %2 {offsets = [0, 32], sizes = [32, 32], strides = [1, 1]} : vector<32x128xf32> to vector<32x32xf32>
    %42 = vector.extract_strided_slice %4 {offsets = [0, 32], sizes = [1, 32], strides = [1, 1]} : vector<1x128xf32> to vector<1x32xf32>
    %43 = vector.broadcast %42 : vector<1x32xf32> to vector<32x32xf32>
    %44 = arith.mulf %41, %43 : vector<32x32xf32>
    %cst_18 = arith.constant dense<0.000000e+00> : vector<32xf32>
    %45 = vector.multi_reduction <add>, %44, %cst_18 [1] : vector<32x32xf32> to vector<32xf32>
    %46 = vector.shape_cast %45 : vector<32xf32> to vector<32x1xf32>
    %47 = vector.extract_strided_slice %3 {offsets = [0, 32], sizes = [1, 32], strides = [1, 1]} : vector<1x128xf32> to vector<1x32xf32>
    %48 = vector.broadcast %47 : vector<1x32xf32> to vector<32x32xf32>
    %49 = arith.mulf %41, %48 : vector<32x32xf32>
    %cst_19 = arith.constant dense<0.000000e+00> : vector<32xf32>
    %50 = vector.multi_reduction <add>, %49, %cst_19 [1] : vector<32x32xf32> to vector<32xf32>
    %51 = vector.shape_cast %50 : vector<32xf32> to vector<32x1xf32>
    %52 = tpu.transpose %51, [1, 0] : vector<32x1xf32> -> vector<1x32xf32>
    %53 = vector.broadcast %46 : vector<32x1xf32> to vector<32x32xf32>
    %54 = vector.broadcast %52 : vector<1x32xf32> to vector<32x32xf32>
    %55 = arith.addf %53, %54 : vector<32x32xf32>
    %cst_20 = arith.constant 0.000000e+00 : f32
    %56 = vector.broadcast %cst_20 : f32 to vector<32x32xf32>
    %57 = arith.cmpf ogt, %55, %56 : vector<32x32xf32>
    %cst_21 = arith.constant 2.000000e-01 : f32
    %58 = vector.broadcast %cst_21 : f32 to vector<32x32xf32>
    %59 = arith.mulf %58, %55 : vector<32x32xf32>
    %60 = arith.select %57, %55, %59 : vector<32x32xi1>, vector<32x32xf32>
    %cst_22 = arith.constant -1.000000e+30 : f32
    %61 = vector.broadcast %cst_22 : f32 to vector<32x32xf32>
    %62 = arith.select %7, %60, %61 : vector<32x32xi1>, vector<32x32xf32>
    %cst_23 = arith.constant dense<0xFF800000> : vector<32xf32>
    %63 = vector.multi_reduction <maximumf>, %62, %cst_23 [1] : vector<32x32xf32> to vector<32xf32>
    %64 = vector.shape_cast %63 : vector<32xf32> to vector<32x1xf32>
    %65 = vector.broadcast %64 : vector<32x1xf32> to vector<32x32xf32>
    %66 = arith.subf %62, %65 : vector<32x32xf32>
    %67 = math.exp %66 : vector<32x32xf32>
    %cst_24 = arith.constant dense<0.000000e+00> : vector<32xf32>
    %68 = vector.multi_reduction <add>, %67, %cst_24 [1] : vector<32x32xf32> to vector<32xf32>
    %69 = vector.shape_cast %68 : vector<32xf32> to vector<32x1xf32>
    %70 = tpu.reciprocal %69 {approx = true} : vector<32x1xf32> -> vector<32x1xf32>
    %71 = vector.broadcast %70 : vector<32x1xf32> to vector<32x32xf32>
    %72 = arith.mulf %67, %71 : vector<32x32xf32>
    %cst_25 = arith.constant dense<0.000000e+00> : vector<32x32xf32>
    %73 = tpu.matmul %72, %41, %cst_25 {dimension_numbers = #tpu.dot_dimension_numbers<[1], [0], [0], [1], [0, 0, 1, 1], [], []>} : vector<32x32xf32>, vector<32x32xf32>, vector<32x32xf32> -> vector<32x32xf32>
    %74 = vector.extract_strided_slice %2 {offsets = [0, 64], sizes = [32, 32], strides = [1, 1]} : vector<32x128xf32> to vector<32x32xf32>
    %75 = vector.extract_strided_slice %4 {offsets = [0, 64], sizes = [1, 32], strides = [1, 1]} : vector<1x128xf32> to vector<1x32xf32>
    %76 = vector.broadcast %75 : vector<1x32xf32> to vector<32x32xf32>
    %77 = arith.mulf %74, %76 : vector<32x32xf32>
    %cst_26 = arith.constant dense<0.000000e+00> : vector<32xf32>
    %78 = vector.multi_reduction <add>, %77, %cst_26 [1] : vector<32x32xf32> to vector<32xf32>
    %79 = vector.shape_cast %78 : vector<32xf32> to vector<32x1xf32>
    %80 = vector.extract_strided_slice %3 {offsets = [0, 64], sizes = [1, 32], strides = [1, 1]} : vector<1x128xf32> to vector<1x32xf32>
    %81 = vector.broadcast %80 : vector<1x32xf32> to vector<32x32xf32>
    %82 = arith.mulf %74, %81 : vector<32x32xf32>
    %cst_27 = arith.constant dense<0.000000e+00> : vector<32xf32>
    %83 = vector.multi_reduction <add>, %82, %cst_27 [1] : vector<32x32xf32> to vector<32xf32>
    %84 = vector.shape_cast %83 : vector<32xf32> to vector<32x1xf32>
    %85 = tpu.transpose %84, [1, 0] : vector<32x1xf32> -> vector<1x32xf32>
    %86 = vector.broadcast %79 : vector<32x1xf32> to vector<32x32xf32>
    %87 = vector.broadcast %85 : vector<1x32xf32> to vector<32x32xf32>
    %88 = arith.addf %86, %87 : vector<32x32xf32>
    %cst_28 = arith.constant 0.000000e+00 : f32
    %89 = vector.broadcast %cst_28 : f32 to vector<32x32xf32>
    %90 = arith.cmpf ogt, %88, %89 : vector<32x32xf32>
    %cst_29 = arith.constant 2.000000e-01 : f32
    %91 = vector.broadcast %cst_29 : f32 to vector<32x32xf32>
    %92 = arith.mulf %91, %88 : vector<32x32xf32>
    %93 = arith.select %90, %88, %92 : vector<32x32xi1>, vector<32x32xf32>
    %cst_30 = arith.constant -1.000000e+30 : f32
    %94 = vector.broadcast %cst_30 : f32 to vector<32x32xf32>
    %95 = arith.select %7, %93, %94 : vector<32x32xi1>, vector<32x32xf32>
    %cst_31 = arith.constant dense<0xFF800000> : vector<32xf32>
    %96 = vector.multi_reduction <maximumf>, %95, %cst_31 [1] : vector<32x32xf32> to vector<32xf32>
    %97 = vector.shape_cast %96 : vector<32xf32> to vector<32x1xf32>
    %98 = vector.broadcast %97 : vector<32x1xf32> to vector<32x32xf32>
    %99 = arith.subf %95, %98 : vector<32x32xf32>
    %100 = math.exp %99 : vector<32x32xf32>
    %cst_32 = arith.constant dense<0.000000e+00> : vector<32xf32>
    %101 = vector.multi_reduction <add>, %100, %cst_32 [1] : vector<32x32xf32> to vector<32xf32>
    %102 = vector.shape_cast %101 : vector<32xf32> to vector<32x1xf32>
    %103 = tpu.reciprocal %102 {approx = true} : vector<32x1xf32> -> vector<32x1xf32>
    %104 = vector.broadcast %103 : vector<32x1xf32> to vector<32x32xf32>
    %105 = arith.mulf %100, %104 : vector<32x32xf32>
    %cst_33 = arith.constant dense<0.000000e+00> : vector<32x32xf32>
    %106 = tpu.matmul %105, %74, %cst_33 {dimension_numbers = #tpu.dot_dimension_numbers<[1], [0], [0], [1], [0, 0, 1, 1], [], []>} : vector<32x32xf32>, vector<32x32xf32>, vector<32x32xf32> -> vector<32x32xf32>
    %107 = vector.extract_strided_slice %2 {offsets = [0, 96], sizes = [32, 32], strides = [1, 1]} : vector<32x128xf32> to vector<32x32xf32>
    %108 = vector.extract_strided_slice %4 {offsets = [0, 96], sizes = [1, 32], strides = [1, 1]} : vector<1x128xf32> to vector<1x32xf32>
    %109 = vector.broadcast %108 : vector<1x32xf32> to vector<32x32xf32>
    %110 = arith.mulf %107, %109 : vector<32x32xf32>
    %cst_34 = arith.constant dense<0.000000e+00> : vector<32xf32>
    %111 = vector.multi_reduction <add>, %110, %cst_34 [1] : vector<32x32xf32> to vector<32xf32>
    %112 = vector.shape_cast %111 : vector<32xf32> to vector<32x1xf32>
    %113 = vector.extract_strided_slice %3 {offsets = [0, 96], sizes = [1, 32], strides = [1, 1]} : vector<1x128xf32> to vector<1x32xf32>
    %114 = vector.broadcast %113 : vector<1x32xf32> to vector<32x32xf32>
    %115 = arith.mulf %107, %114 : vector<32x32xf32>
    %cst_35 = arith.constant dense<0.000000e+00> : vector<32xf32>
    %116 = vector.multi_reduction <add>, %115, %cst_35 [1] : vector<32x32xf32> to vector<32xf32>
    %117 = vector.shape_cast %116 : vector<32xf32> to vector<32x1xf32>
    %118 = tpu.transpose %117, [1, 0] : vector<32x1xf32> -> vector<1x32xf32>
    %119 = vector.broadcast %112 : vector<32x1xf32> to vector<32x32xf32>
    %120 = vector.broadcast %118 : vector<1x32xf32> to vector<32x32xf32>
    %121 = arith.addf %119, %120 : vector<32x32xf32>
    %cst_36 = arith.constant 0.000000e+00 : f32
    %122 = vector.broadcast %cst_36 : f32 to vector<32x32xf32>
    %123 = arith.cmpf ogt, %121, %122 : vector<32x32xf32>
    %cst_37 = arith.constant 2.000000e-01 : f32
    %124 = vector.broadcast %cst_37 : f32 to vector<32x32xf32>
    %125 = arith.mulf %124, %121 : vector<32x32xf32>
    %126 = arith.select %123, %121, %125 : vector<32x32xi1>, vector<32x32xf32>
    %cst_38 = arith.constant -1.000000e+30 : f32
    %127 = vector.broadcast %cst_38 : f32 to vector<32x32xf32>
    %128 = arith.select %7, %126, %127 : vector<32x32xi1>, vector<32x32xf32>
    %cst_39 = arith.constant dense<0xFF800000> : vector<32xf32>
    %129 = vector.multi_reduction <maximumf>, %128, %cst_39 [1] : vector<32x32xf32> to vector<32xf32>
    %130 = vector.shape_cast %129 : vector<32xf32> to vector<32x1xf32>
    %131 = vector.broadcast %130 : vector<32x1xf32> to vector<32x32xf32>
    %132 = arith.subf %128, %131 : vector<32x32xf32>
    %133 = math.exp %132 : vector<32x32xf32>
    %cst_40 = arith.constant dense<0.000000e+00> : vector<32xf32>
    %134 = vector.multi_reduction <add>, %133, %cst_40 [1] : vector<32x32xf32> to vector<32xf32>
    %135 = vector.shape_cast %134 : vector<32xf32> to vector<32x1xf32>
    %136 = tpu.reciprocal %135 {approx = true} : vector<32x1xf32> -> vector<32x1xf32>
    %137 = vector.broadcast %136 : vector<32x1xf32> to vector<32x32xf32>
    %138 = arith.mulf %133, %137 : vector<32x32xf32>
    %cst_41 = arith.constant dense<0.000000e+00> : vector<32x32xf32>
    %139 = tpu.matmul %138, %107, %cst_41 {dimension_numbers = #tpu.dot_dimension_numbers<[1], [0], [0], [1], [0, 0, 1, 1], [], []>} : vector<32x32xf32>, vector<32x32xf32>, vector<32x32xf32> -> vector<32x32xf32>
    %140 = tpu.concatenate %40, %73, %106, %139 in 1 : vector<32x32xf32>, vector<32x32xf32>, vector<32x32xf32>, vector<32x32xf32> -> vector<32x128xf32>
    %c0_42 = arith.constant 0 : index
    %c0_43 = arith.constant 0 : index
    %141 = vector.load %arg4[%c0_42, %c0_43] : memref<1x128xf32, #tpu.memory_space<vmem>>, vector<1x128xf32>
    %142 = vector.broadcast %141 : vector<1x128xf32> to vector<32x128xf32>
    %143 = arith.addf %140, %142 : vector<32x128xf32>
    %cst_44 = arith.constant 0.000000e+00 : f32
    %144 = vector.broadcast %cst_44 : f32 to vector<32x128xf32>
    %145 = arith.cmpf ogt, %143, %144 : vector<32x128xf32>
    %cst_45 = arith.constant 0.000000e+00 : f32
    %146 = vector.broadcast %cst_45 : f32 to vector<32x128xf32>
    %147 = arith.minimumf %143, %146 : vector<32x128xf32>
    %148 = math.exp %147 : vector<32x128xf32>
    %cst_46 = arith.constant 1.000000e+00 : f32
    %149 = vector.broadcast %cst_46 : f32 to vector<32x128xf32>
    %150 = arith.subf %148, %149 : vector<32x128xf32>
    %151 = arith.select %145, %143, %150 : vector<32x128xi1>, vector<32x128xf32>
    %c0_47 = arith.constant 0 : index
    %c0_48 = arith.constant 0 : index
    %152 = vector.load %arg6[%c0_47, %c0_48] : memref<32x128xf32, #tpu.memory_space<vmem>>, vector<32x128xf32>
    tpu.vector_store %arg6[%c0_47, %c0_48], %151 {strides = array<i32>} : memref<32x128xf32, #tpu.memory_space<vmem>>, vector<32x128xf32>,
    return
  }
}

</mosaic_0001>

<bundles_post_ra>
// kernel: tpu_custom_call.1
= control target key start
LH: loop header
LB: loop body
LE: loop exit
PB: predicated region body
PF: predicated region fallthrough
CT: control target
= control target key end

     0   :  { %vm33_vm0 = vcmask 130048   ;;  %s2078_s0 = inlined_call_operand.vmem [shape: f32[32,16], index: 0, kind: input, shape index: {}]   ;;  %s2079_s1 = inlined_call_operand.vmem [shape: f32[16,128], index: 1, kind: input, shape index: {}]   ;;  %s2080_s2 = inlined_call_operand.vmem [shape: f32[1,128], index: 2, kind: input, shape index: {}]   ;;  %s2081_s3 = inlined_call_operand.vmem [shape: f32[1,128], index: 3, kind: input, shape index: {}]   ;;  %s2082_s4 = inlined_call_operand.vmem [shape: f32[1,128], index: 4, kind: input, shape index: {}]   ;;  %s2083_s5 = inlined_call_operand.vmem [shape: bf16[32,32], index: 5, kind: input, shape index: {}]   ;;  %s2084_s6 = inlined_call_operand.hbm [shape: f32[32,128], index: 6, kind: output, shape index: {}]  }
   0x1   :  { %v31_v0 = vld [vmem:[%s2079_s1] sm:$0xff]  ;;  %v32_v1 = vld [vmem:[%s2079_s1 + $0x8] sm:$0xff] }
   0x2   :  { %v27_v2 = vld [vmem:[%s2078_s0] sm:$0xff]  ;;  %v1426_v3 = vpack.c.bf16 %v32_v1, %v31_v0 }
   0x3   :  { %1364 = vmatprep.mubr.msk.f32.mxu0 %vm33_vm0, %v27_v2 }
   0x4   :  { %11 = vsyncpa [#allocation3], 0  ;;  %1427 = vmatprep.subr.bf16.mxu0 %v1426_v3  ;;  %v28_v4 = vld [vmem:[%s2078_s0 + $0x8] sm:$0xff]  ;;  %v29_v5 = vld [vmem:[%s2078_s0 + $0x10] sm:$0xff]  ;;  %s1596_s10 = smov 96   ;;  %s1598_s12 = smov 32  }
   0x5   :  { %1429 = vmatpush3.bf16.msra.mxu0 %v1426_v3  ;;  %v30_v6 = vld [vmem:[%s2078_s0 + $0x18] sm:$0xff]  ;;  %v1300_v7 = vld [vmem:[%s2080_s2] ss:$0 sm:$0xff]  ;;  %s1597_s2 = smov 64   ;;  %vm151_vm1 = vcmask 261120  }
   0x6   :  { %v1299_v13 = vld [vmem:[%s2081_s3] ss:$0 sm:$0xff] }
   0x8   :  { %1365 = vmatmul.mubr.msk.f32.vlgmr.msra.gmra.mrb[0].mxu0 %vm33_vm0, %v28_v4 }
   0x9   :  { %1367 = vmatprep.mubr.msk.f32.mxu0 %vm33_vm0, %v29_v5 }
   0xc   :  { %1368 = vmatmul.mubr.msk.f32.gmra.mrb[2].mxu0 %vm33_vm0, %v30_v6 }
  0xdb   :  { %v1366_v8 = vpop.f32.mrb[0].mxu0 }
  0xdc   :  { %v112_v9 = vpop.f32.mrb[1].mxu0  ;;  %v171_v10 = vmul.f32 %v1366_v8, %v1300_v7  ;;  %v148_v23 = vmul.f32 %v1366_v8, %v1299_v13 }
  0xdd   :  { %v1659_v11 = vpack.i.bf16 %v1366_v8, %v112_v9  ;;  %v1430_v12 = vpack.c.bf16 %v1366_v8, %v112_v9  ;;  %v170_v22 = vmul.f32 %v1300_v7, %v112_v9  ;;  %v147_v24 = vmul.f32 %v1299_v13, %v112_v9 }
  0xde   :  { %429 = vrot.lane.b32.xlu0 %v171_v10, %s1596_s10  ;;  %v177_v25 = vsel %vm151_vm1, %v171_v10, 0.0  ;;  %v155_v27 = vsel %vm151_vm1, %v148_v23, 0.0 }
  0xdf   :  { %1471 = vrot.lane.b32.xlu1 %v1659_v11, %s1596_s10  ;;  %1431 = vmatprep.subr.bf16.mxu1 %v1430_v12  ;;  %v1369_v14 = vpop.f32.mrb[2].mxu0  ;;  %v152_v26 = vsel %vm151_vm1, %v147_v24, 0.0  ;;  %v174_v28 = vsel %vm151_vm1, %v170_v22, 0.0 }
  0xe0   :  { %1433 = vmatpush3.bf16.msra.mxu1 %v1430_v12  ;;  %v173_v15 = vmul.f32 %v1369_v14, %v1300_v7  ;;  %v122_v16 = vpop.f32.mrb[3].mxu0  ;;  %v150_v17 = vmul.f32 %v1369_v14, %v1299_v13 }
  0xe1   :  { %v1434_v18 = vpack.c.bf16 %v1369_v14, %v122_v16  ;;  %v172_v19 = vmul.f32 %v1300_v7, %v122_v16  ;;  %v1667_v20 = vmul.f32 %v1299_v13, %v122_v16  ;;  %v1669_v21 = vpack.i.bf16 %v1369_v14, %v122_v16 }
  0xe2   :  { %690 = vrot.lane.b32.xlu0 %v171_v10, %s1597_s2  ;;  %v161_v35 = vsel %vm151_vm1, %v150_v17, 0.0  ;;  %v183_v37 = vsel %vm151_vm1, %v173_v15, 0.0 }
  0xe3   :  { %947 = vrot.lane.b32.xlu1 %v171_v10, %s1598_s12  ;;  %1435 = vmatprep.subr.bf16.mxu1 %v1434_v18  ;;  %v180_v40 = vsel %vm151_vm1, %v172_v19, 0.0  ;;  %v158_v44 = vsel %vm151_vm1, %v1667_v20, 0.0 }
  0xe4   :  { %1437 = vmatpush3.bf16.msra.mxu1 %v1434_v18 }
  0xe6   :  { %427 = vrot.lane.b32.xlu0 %v170_v22, %s1596_s10 }
  0xe7   :  { %401 = vrot.lane.b32.xlu1 %v148_v23, %s1596_s10 }
  0xea   :  { %688 = vrot.lane.b32.xlu0 %v170_v22, %s1597_s2 }
  0xeb   :  { %666 = vrot.lane.b32.xlu1 %v148_v23, %s1597_s2 }
  0xee   :  { %399 = vrot.lane.b32.xlu0 %v147_v24, %s1596_s10 }
  0xef   :  { %923 = vrot.lane.b32.xlu1 %v148_v23, %s1598_s12 }
  0xf2   :  { %664 = vrot.lane.b32.xlu0 %v147_v24, %s1597_s2 }
  0xf3   :  { %945 = vrot.lane.b32.xlu1 %v170_v22, %s1598_s12 }
  0xf6   :  { %921 = vrot.lane.b32.xlu0 %v147_v24, %s1598_s12 }
 0x115   :  { %178 = vadd.xlane.f32.xlu0 %v177_v25 }
 0x117   :  { %153 = vadd.xlane.f32.xlu1 %v152_v26 }
 0x119   :  { %156 = vadd.xlane.f32.xlu0 %v155_v27 }
 0x11d   :  { %175 = vadd.xlane.f32.xlu0 %v174_v28 }
 0x128   :  { %433 = vrot.lane.b32.xlu1 %v173_v15, %s1596_s10 }
 0x12c   :  { %951 = vrot.lane.b32.xlu1 %v173_v15, %s1598_s12 }
 0x130   :  { %405 = vrot.lane.b32.xlu1 %v150_v17, %s1596_s10 }
 0x133   :  { %694 = vrot.lane.b32.xlu0 %v173_v15, %s1597_s2 }
 0x134   :  { %670 = vrot.lane.b32.xlu1 %v150_v17, %s1597_s2 }
 0x137   :  { %692 = vrot.lane.b32.xlu0 %v172_v19, %s1597_s2 }
 0x138   :  { %927 = vrot.lane.b32.xlu1 %v150_v17, %s1598_s12 }
 0x13b   :  { %403 = vrot.lane.b32.xlu0 %v1667_v20, %s1596_s10 }
 0x13c   :  { %431 = vrot.lane.b32.xlu1 %v172_v19, %s1596_s10 }
 0x13f   :  { %668 = vrot.lane.b32.xlu0 %v1667_v20, %s1597_s2 }
 0x140   :  { %949 = vrot.lane.b32.xlu1 %v172_v19, %s1598_s12 }
 0x143   :  { %925 = vrot.lane.b32.xlu0 %v1667_v20, %s1598_s12 }
 0x150   :  { %v430_v33 = vpop.permute.xlu0 %429 }
 0x151   :  { %v1472_v29 = vpop.permute.xlu1 %1471  ;;  %v442_v39 = vsel %vm151_vm1, %v430_v33, 0.0 }
 0x152   :  { %v1474_v30 = vunpack.i.h.bf16 %v1472_v29  ;;  %v1473_v31 = vunpack.i.l.bf16 %v1472_v29 }
 0x154   :  { %v1438_v32 = vpack.c.bf16 %v1474_v30, %v1473_v31  ;;  %v691_v36 = vpop.permute.xlu0 %690 }
 0x155   :  { %v948_v34 = vpop.permute.xlu1 %947  ;;  %v703_v47 = vsel %vm151_vm1, %v691_v36, 0.0 }
 0x156   :  { %1439 = vmatprep.subr.bf16.mxu0 %v1438_v32  ;;  %v960_v42 = vsel %vm151_vm1, %v948_v34, 0.0 }
 0x157   :  { %1441 = vmatpush3.bf16.msra.mxu0 %v1438_v32 }
 0x158   :  { %v428_v41 = vpop.permute.xlu0 %427 }
 0x159   :  { %v402_v38 = vpop.permute.xlu1 %401  ;;  %v439_v50 = vsel %vm151_vm1, %v428_v41, 0.0  ;;  %v134_v41 = vld [vmem:[%s2083_s5 + $0x4] sm:$0xf] }
 0x15a   :  { %v414_v45 = vsel %vm151_vm1, %v402_v38, 0.0  ;;  %vm138_vm2 = vcmp.gt.bf16.partialorder %v134_v41, 0 }
 0x15c   :  { %v689_v46 = vpop.permute.xlu0 %688 }
 0x15d   :  { %v667_v43 = vpop.permute.xlu1 %666  ;;  %v700_v54 = vsel %vm151_vm1, %v689_v46, 0.0 }
 0x15e   :  { %v679_v49 = vsel %vm151_vm1, %v667_v43, 0.0 }
 0x160   :  { %v400_v51 = vpop.permute.xlu0 %399 }
 0x161   :  { %v924_v48 = vpop.permute.xlu1 %923  ;;  %v411_v57 = vsel %vm151_vm1, %v400_v51, 0.0 }
 0x162   :  { %162 = vadd.xlane.f32.xlu0 %v161_v35  ;;  %v936_v52 = vsel %vm151_vm1, %v924_v48, 0.0 }
 0x164   :  { %184 = vadd.xlane.f32.xlu1 %v183_v37  ;;  %v665_v56 = vpop.permute.xlu0 %664 }
 0x165   :  { %v946_v53 = vpop.permute.xlu1 %945  ;;  %v676_v58 = vsel %vm151_vm1, %v665_v56, 0.0 }
 0x166   :  { %443 = vadd.xlane.f32.xlu0 %v442_v39  ;;  %v957_v55 = vsel %vm151_vm1, %v946_v53, 0.0  ;;  %v218_v39 = vlaneseq }
 0x168   :  { %181 = vadd.xlane.f32.xlu1 %v180_v40  ;;  %v922_v59 = vpop.permute.xlu0 %921  ;;  %v219_v43 = vshrl.u32 %v218_v39, 7 }
 0x169   :  { %v933_v60 = vsel %vm151_vm1, %v922_v59, 0.0 }
 0x16a   :  { %961 = vadd.xlane.f32.xlu0 %v960_v42  ;;  %v133_v42 = vld [vmem:[%s2083_s5] sm:$0xf]  ;;  %v1768_v48 = vsub.s32 0, %v219_v43 }
 0x16b   :  { %vm137_vm3 = vcmp.gt.bf16.partialorder %v133_v42, 0 }
 0x16c   :  { %159 = vadd.xlane.f32.xlu1 %v158_v44  ;;  %v135_v44 = vld [vmem:[%s2083_s5 + $0x8] sm:$0xf] }
 0x16d   :  { %vm139_vm4 = vcmp.gt.bf16.partialorder %v135_v44, 0 }
 0x16e   :  { %415 = vadd.xlane.f32.xlu0 %v414_v45  ;;  %v136_v45 = vld [vmem:[%s2083_s5 + $0xc] sm:$0xf] }
 0x16f   :  { %vm140_vm5 = vcmp.gt.bf16.partialorder %v136_v45, 0 }
 0x170   :  { %704 = vadd.xlane.f32.xlu1 %v703_v47 }
 0x172   :  { %680 = vadd.xlane.f32.xlu0 %v679_v49  ;;  %v1599_v49 = vmov 0  }
 0x173   :  { %v238_v51 = vsel %vm137_vm3, 65537, %v1599_v49  ;;  %v241_v53 = vsel %vm140_vm5, 65537, %v1599_v49 }
 0x174   :  { %440 = vadd.xlane.f32.xlu1 %v439_v50  ;;  %v239_v50 = vsel %vm138_vm2, 65537, %v1599_v49  ;;  %v242_v56 = vunpack.c.l.b16 %v238_v51 }
 0x176   :  { %937 = vadd.xlane.f32.xlu0 %v936_v52  ;;  %v240_v52 = vsel %vm139_vm4, 65537, %v1599_v49  ;;  %vm1777_vm7 = vcmp.ne.s32.totalorder %v242_v56, 0 }
 0x177   :  { %v244_v59 = vunpack.c.l.b16 %v240_v52 }
 0x178   :  { %701 = vadd.xlane.f32.xlu1 %v700_v54 }
 0x179   :  { %vm1781_vm12 = vcmp.ne.s32.totalorder %v244_v59, 0 }
 0x17a   :  { %958 = vadd.xlane.f32.xlu0 %v957_v55  ;;  %v243_v55 = vunpack.c.l.b16 %v239_v50 }
 0x17c   :  { %412 = vadd.xlane.f32.xlu1 %v411_v57  ;;  %vm1773_vm6 = vcmp.ne.s32.totalorder %v243_v55, 0 }
 0x180   :  { %677 = vadd.xlane.f32.xlu1 %v676_v58 }
 0x184   :  { %934 = vadd.xlane.f32.xlu1 %v933_v60  ;;  %v245_v60 = vunpack.c.l.b16 %v241_v53 }
 0x186   :  { %vm1785_vm13 = vcmp.ne.s32.totalorder %v245_v60, 0 }
 0x1a2   :  { %v179_v61 = vpop.xlane.xlu0 %178 }
 0x1a4   :  { %v1718_v62 = vpop.xlane.xlu1 %153 }
 0x1a6   :  { %v1720_v63 = vpop.xlane.xlu0 %156 }
 0x1a8   :  { %v434_v0 = vpop.permute.xlu1 %433 }
 0x1a9   :  { %v448_v1 = vsel %vm151_vm1, %v434_v0, 0.0 }
 0x1aa   :  { %v176_v2 = vpop.xlane.xlu0 %175  ;;  %449 = vadd.xlane.f32.xlu0 %v448_v1 }
 0x1ac   :  { %v952_v3 = vpop.permute.xlu1 %951 }
 0x1ad   :  { %v966_v4 = vsel %vm151_vm1, %v952_v3, 0.0 }
 0x1ae   :  { %v695_v5 = vpop.permute.xlu0 %694  ;;  %967 = vadd.xlane.f32.xlu0 %v966_v4 }
 0x1af   :  { %v709_v6 = vsel %vm151_vm1, %v695_v5, 0.0 }
 0x1b0   :  { %v406_v7 = vpop.permute.xlu1 %405  ;;  %710 = vadd.xlane.f32.xlu1 %v709_v6 }
 0x1b1   :  { %v420_v8 = vsel %vm151_vm1, %v406_v7, 0.0 }
 0x1b2   :  { %v693_v9 = vpop.permute.xlu0 %692  ;;  %421 = vadd.xlane.f32.xlu0 %v420_v8 }
 0x1b3   :  { %v706_v10 = vsel %vm151_vm1, %v693_v9, 0.0 }
 0x1b4   :  { %v671_v12 = vpop.permute.xlu1 %670  ;;  %707 = vadd.xlane.f32.xlu1 %v706_v10 }
 0x1b5   :  { %v685_v13 = vsel %vm151_vm1, %v671_v12, 0.0 }
 0x1b6   :  { %686 = vadd.xlane.f32.xlu0 %v685_v13  ;;  %v404_v14 = vpop.permute.xlu0 %403 }
 0x1b7   :  { %v417_v15 = vsel %vm151_vm1, %v404_v14, 0.0 }
 0x1b8   :  { %v928_v16 = vpop.permute.xlu1 %927  ;;  %418 = vadd.xlane.f32.xlu1 %v417_v15 }
 0x1b9   :  { %v942_v17 = vsel %vm151_vm1, %v928_v16, 0.0 }
 0x1ba   :  { %943 = vadd.xlane.f32.xlu0 %v942_v17  ;;  %v669_v18 = vpop.permute.xlu0 %668 }
 0x1bb   :  { %v682_v19 = vsel %vm151_vm1, %v669_v18, 0.0 }
 0x1bc   :  { %v432_v20 = vpop.permute.xlu1 %431  ;;  %683 = vadd.xlane.f32.xlu1 %v682_v19 }
 0x1bd   :  { %v445_v22 = vsel %vm151_vm1, %v432_v20, 0.0 }
 0x1be   :  { %446 = vadd.xlane.f32.xlu0 %v445_v22  ;;  %v926_v23 = vpop.permute.xlu0 %925 }
 0x1bf   :  { %v939_v24 = vsel %vm151_vm1, %v926_v23, 0.0 }
 0x1c0   :  { %v950_v25 = vpop.permute.xlu1 %949  ;;  %940 = vadd.xlane.f32.xlu1 %v939_v24 }
 0x1c1   :  { %v963_v26 = vsel %vm151_vm1, %v950_v25, 0.0 }
 0x1c2   :  { %964 = vadd.xlane.f32.xlu0 %v963_v26 }
 0x1ef   :  { %v163_v46 = vpop.xlane.xlu0 %162 }
 0x1f1   :  { %v185_v27 = vpop.xlane.xlu1 %184 }
 0x1f3   :  { %186 = vxpose.xlu1.b32.start [1/4] (short) (narrow) %v176_v2, 8  ;;  %v444_v58 = vpop.xlane.xlu0 %443 }
 0x1f5   :  { %v182_v28 = vpop.xlane.xlu1 %181 }
 0x1f7   :  { %187 = vxpose.xlu1.b32.cont [2/4] (short) (narrow) %v179_v61, 8  ;;  %v962_v12 = vpop.xlane.xlu0 %961 }
 0x1f9   :  { %v160_v29 = vpop.xlane.xlu1 %159 }
 0x1fb   :  { %188 = vxpose.xlu1.b32.cont [3/4] (short) (narrow) %v182_v28, 8  ;;  %v416_v24 = vpop.xlane.xlu0 %415 }
 0x1fd   :  { %v1734_v30 = vpop.xlane.xlu1 %704 }
 0x1ff   :  { %189 = vxpose.xlu1.b32.end [4/4] (short) (narrow) %v185_v27, 8  ;;  %v1813_v25 = vpop.xlane.xlu0 %680 }
 0x201   :  { %v1736_v31 = vpop.xlane.xlu1 %440 }
 0x203   :  { %v938_v26 = vpop.xlane.xlu0 %937 }
 0x205   :  { %v1738_v32 = vpop.xlane.xlu1 %701 }
 0x207   :  { %v959_v27 = vpop.xlane.xlu0 %958 }
 0x209   :  { %v1740_v33 = vpop.xlane.xlu1 %412 }
 0x20d   :  { %v1742_v34 = vpop.xlane.xlu1 %677 }
 0x211   :  { %v1744_v35 = vpop.xlane.xlu1 %934 }
 0x237   :  { %v450_v28 = vpop.xlane.xlu0 %449 }
 0x23d   :  { %v1746_v36 = vpop.xlane.xlu1 %710 }
 0x241   :  { %v1748_v37 = vpop.xlane.xlu1 %707 }
 0x245   :  { %v1750_v38 = vpop.xlane.xlu1 %418 }
 0x249   :  { %v1752_v40 = vpop.xlane.xlu1 %683 }
 0x24d   :  { %v1766_v47 = vpop.xlane.xlu1 %940 }
 0x273   :  { %v202_v54 = vpop.trf.xlu1 }
 0x274   :  { %v221_v57 = vrot.slane %v202_v54, %v1768_v48 }
 0x276   :  { %v223_v61 = vadd.f32 %v221_v57, %v1720_v63  ;;  %v222_v0 = vadd.f32 %v221_v57, %v1718_v62  ;;  %v224_v1 = vadd.f32 %v221_v57, %v160_v29  ;;  %v225_v2 = vadd.f32 %v221_v57, %v163_v46  ;;  %v968_v29 = vpop.xlane.xlu0 %967 }
 0x278   :  { %vm227_vm8 = vcmp.gt.f32.partialorder %v223_v61, 0.0  ;;  %v231_v5 = vmul.f32 0.2, %v223_v61  ;;  %vm226_vm9 = vcmp.gt.f32.partialorder %v222_v0, 0.0  ;;  %v230_v6 = vmul.f32 0.2, %v222_v0 }
 0x279   :  { %vm228_vm10 = vcmp.gt.f32.partialorder %v224_v1, 0.0  ;;  %v232_v7 = vmul.f32 0.2, %v224_v1  ;;  %vm229_vm11 = vcmp.gt.f32.partialorder %v225_v2, 0.0  ;;  %v233_v63 = vmul.f32 0.2, %v225_v2 }
 0x27a   :  { %v235_v8 = vsel %vm227_vm8, %v223_v61, %v231_v5  ;;  %v234_v62 = vsel %vm226_vm9, %v222_v0, %v230_v6  ;;  %v422_v39 = vpop.xlane.xlu0 %421 }
 0x27b   :  { %v1791_v13 = vsel %vm1773_vm6, %v235_v8, -1e+30  ;;  %v1795_v14 = vsel %vm1777_vm7, %v234_v62, -1e+30  ;;  %v236_v15 = vsel %vm228_vm10, %v224_v1, %v232_v7  ;;  %v237_v16 = vsel %vm229_vm11, %v225_v2, %v233_v63 }
 0x27c   :  { %v257_v17 = vsel %vm151_vm1, %v1791_v13, -inf  ;;  %v254_v18 = vsel %vm151_vm1, %v1795_v14, -inf  ;;  %v1803_v19 = vsel %vm1781_vm12, %v236_v15, -1e+30  ;;  %v1807_v20 = vsel %vm1785_vm13, %v237_v16, -1e+30 }
 0x27d   :  { %258 = vmax.xlane.f32.xlu1 %v257_v17  ;;  %255 = vmax.xlane.f32.xlu0 %v254_v18  ;;  %v260_v22 = vsel %vm151_vm1, %v1803_v19, -inf  ;;  %v263_v23 = vsel %vm151_vm1, %v1807_v20, -inf }
 0x27e   :  { %v687_v41 = vpop.xlane.xlu0 %686 }
 0x281   :  { %261 = vmax.xlane.f32.xlu1 %v260_v22  ;;  %264 = vmax.xlane.f32.xlu0 %v263_v23 }
 0x282   :  { %v1816_v42 = vpop.xlane.xlu0 %943 }
 0x286   :  { %v447_v43 = vpop.xlane.xlu0 %446 }
 0x28a   :  { %v965_v44 = vpop.xlane.xlu0 %964 }
 0x2ae   :  { %451 = vxpose.xlu0.b32.start [1/4] (short) (narrow) %v1736_v31, 8 }
 0x2b2   :  { %452 = vxpose.xlu0.b32.cont [2/4] (short) (narrow) %v444_v58, 8 }
 0x2b4   :  { %969 = vxpose.xlu1.b32.start [1/4] (short) (narrow) %v959_v27, 8 }
 0x2b6   :  { %453 = vxpose.xlu0.b32.cont [3/4] (short) (narrow) %v447_v43, 8 }
 0x2b8   :  { %970 = vxpose.xlu1.b32.cont [2/4] (short) (narrow) %v962_v12, 8 }
 0x2ba   :  { %454 = vxpose.xlu0.b32.end [4/4] (short) (narrow) %v450_v28, 8 }
 0x2bc   :  { %971 = vxpose.xlu1.b32.cont [3/4] (short) (narrow) %v965_v44, 8 }
 0x2be   :  { %712 = vxpose.xlu0.b32.start [1/4] (short) (narrow) %v1738_v32, 8 }
 0x2c0   :  { %972 = vxpose.xlu1.b32.end [4/4] (short) (narrow) %v968_v29, 8 }
 0x2c2   :  { %713 = vxpose.xlu0.b32.cont [2/4] (short) (narrow) %v1734_v30, 8 }
 0x2c6   :  { %714 = vxpose.xlu0.b32.cont [3/4] (short) (narrow) %v1748_v37, 8 }
 0x2ca   :  { %715 = vxpose.xlu0.b32.end [4/4] (short) (narrow) %v1746_v36, 8 }
 0x30a   :  { %v1822_v31 = vpop.xlane.xlu0 %255  ;;  %v1826_v46 = vpop.xlane.xlu1 %258 }
 0x30b   :  { %v267_v9 = vsub.f32 %v1791_v13, %v1826_v46  ;;  %v266_v10 = vsub.f32 %v1795_v14, %v1822_v31 }
 0x30e   :  { %v1824_v45 = vpop.xlane.xlu0 %264  ;;  %v1829_v51 = vpop.xlane.xlu1 %261 }
 0x32e   :  { %v467_v49 = vpop.trf.xlu0 }
 0x32f   :  { %v486_v50 = vrot.slane %v467_v49, %v1768_v48 }
 0x331   :  { %v488_v52 = vadd.f32 %v486_v50, %v416_v24  ;;  %v487_v32 = vadd.f32 %v486_v50, %v1740_v33  ;;  %v490_v53 = vadd.f32 %v486_v50, %v422_v39  ;;  %v489_v30 = vadd.f32 %v486_v50, %v1750_v38 }
 0x333   :  { %vm492_vm14 = vcmp.gt.f32.partialorder %v488_v52, 0.0  ;;  %v496_v37 = vmul.f32 0.2, %v488_v52  ;;  %vm491_vm15 = vcmp.gt.f32.partialorder %v487_v32, 0.0  ;;  %v495_v36 = vmul.f32 0.2, %v487_v32 }
 0x334   :  { %vm494_vm0 = vcmp.gt.f32.partialorder %v490_v53, 0.0  ;;  %v498_v54 = vmul.f32 0.2, %v490_v53  ;;  %vm493_vm2 = vcmp.gt.f32.partialorder %v489_v30, 0.0  ;;  %v497_v55 = vmul.f32 0.2, %v489_v30  ;;  %v985_v56 = vpop.trf.xlu1 }
 0x335   :  { %v500_v57 = vsel %vm492_vm14, %v488_v52, %v496_v37  ;;  %v499_v58 = vsel %vm491_vm15, %v487_v32, %v495_v36  ;;  %v1004_v1 = vrot.slane %v985_v56, %v1768_v48 }
 0x336   :  { %v1835_v59 = vsel %vm1773_vm6, %v500_v57, -1e+30  ;;  %v1839_v33 = vsel %vm1777_vm7, %v499_v58, -1e+30  ;;  %v502_v38 = vsel %vm494_vm0, %v490_v53, %v498_v54  ;;  %v501_v60 = vsel %vm493_vm2, %v489_v30, %v497_v55 }
 0x337   :  { %v510_v61 = vsel %vm151_vm1, %v1835_v59, -inf  ;;  %v507_v0 = vsel %vm151_vm1, %v1839_v33, -inf  ;;  %v1848_v2 = vsel %vm1785_vm13, %v502_v38, -1e+30  ;;  %v1852_v5 = vsel %vm1781_vm12, %v501_v60, -1e+30 }
 0x338   :  { %511 = vmax.xlane.f32.xlu0 %v510_v61  ;;  %508 = vmax.xlane.f32.xlu1 %v507_v0  ;;  %v516_v6 = vsel %vm151_vm1, %v1848_v2, -inf  ;;  %v513_v7 = vsel %vm151_vm1, %v1852_v5, -inf  ;;  %v1006_v63 = vadd.f32 %v1004_v1, %v938_v26  ;;  %v1005_v8 = vadd.f32 %v1004_v1, %v1744_v35 }
 0x339   :  { %v1008_v28 = vadd.f32 %v1004_v1, %v1816_v42  ;;  %v272_v60 = vmul.f32 1.442695, %v267_v9  ;;  %v269_v61 = vsub.f32 %v1807_v20, %v1824_v45  ;;  %v270_v0 = vmul.f32 1.442695, %v266_v10 }
 0x33a   :  { %vm1010_vm3 = vcmp.gt.f32.partialorder %v1006_v63, 0.0  ;;  %v1014_v15 = vmul.f32 0.2, %v1006_v63  ;;  %vm1009_vm4 = vcmp.gt.f32.partialorder %v1005_v8, 0.0  ;;  %v1013_v16 = vmul.f32 0.2, %v1005_v8 }
 0x33b   :  { %v1016_v52 = vmul.f32 0.2, %v1008_v28  ;;  %vm1012_vm11 = vcmp.gt.f32.partialorder %v1008_v28, 0.0  ;;  %1500 = vpow2.f32 %v272_v60 }
 0x33c   :  { %517 = vmax.xlane.f32.xlu0 %v516_v6  ;;  %514 = vmax.xlane.f32.xlu1 %v513_v7  ;;  %v1018_v27 = vsel %vm1010_vm3, %v1006_v63, %v1014_v15  ;;  %v1017_v35 = vsel %vm1009_vm4, %v1005_v8, %v1013_v16  ;;  %v276_v6 = vmul.f32 1.442695, %v269_v61  ;;  %1502 = vpow2.f32 %v270_v0 }
 0x33d   :  { %v1883_v42 = vsel %vm1777_vm7, %v1017_v35, -1e+30  ;;  %v1020_v37 = vsel %vm1012_vm11, %v1008_v28, %v1016_v52 }
 0x33e   :  { %v728_v62 = vpop.trf.xlu0  ;;  %v1025_v30 = vsel %vm151_vm1, %v1883_v42, -inf  ;;  %v1903_v56 = vsel %vm1785_vm13, %v1020_v37, -1e+30  ;;  %1504 = vpow2.f32 %v276_v6 }
 0x33f   :  { %v747_v12 = vrot.slane %v728_v62, %v1768_v48  ;;  %v1007_v48 = vadd.f32 %v1004_v1, %v1766_v47  ;;  %v1034_v58 = vsel %vm151_vm1, %v1903_v56, -inf  ;;  %v268_v1 = vsub.f32 %v1803_v19, %v1829_v51 }
 0x341   :  { %v749_v17 = vadd.f32 %v747_v12, %v1813_v25  ;;  %v748_v18 = vadd.f32 %v747_v12, %v1742_v34  ;;  %v751_v22 = vadd.f32 %v747_v12, %v687_v41  ;;  %v750_v23 = vadd.f32 %v747_v12, %v1752_v40 }
 0x342   :  { %v1879_v41 = vsel %vm1773_vm6, %v1018_v27, -1e+30  ;;  %v1015_v32 = vmul.f32 0.2, %v1007_v48  ;;  %vm1011_vm14 = vcmp.gt.f32.partialorder %v1007_v48, 0.0 }
 0x343   :  { %vm753_vm5 = vcmp.gt.f32.partialorder %v749_v17, 0.0  ;;  %v757_v24 = vmul.f32 0.2, %v749_v17  ;;  %vm752_vm8 = vcmp.gt.f32.partialorder %v748_v18, 0.0  ;;  %v756_v26 = vmul.f32 0.2, %v748_v18 }
 0x344   :  { %v759_v43 = vmul.f32 0.2, %v751_v22  ;;  %v758_v44 = vmul.f32 0.2, %v750_v23  ;;  %vm755_vm9 = vcmp.gt.f32.partialorder %v751_v22, 0.0  ;;  %vm754_vm10 = vcmp.gt.f32.partialorder %v750_v23, 0.0 }
 0x345   :  { %v761_v29 = vsel %vm753_vm5, %v749_v17, %v757_v24  ;;  %v760_v39 = vsel %vm752_vm8, %v748_v18, %v756_v26  ;;  %v1028_v53 = vsel %vm151_vm1, %v1879_v41, -inf  ;;  %v1019_v36 = vsel %vm1011_vm14, %v1007_v48, %v1015_v32  ;;  %v1927_v7 = vpop.eup %1500 }
 0x346   :  { %v1867_v34 = vsel %vm1773_vm6, %v761_v29, -1e+30  ;;  %v1871_v40 = vsel %vm1777_vm7, %v760_v39, -1e+30  ;;  %v763_v49 = vsel %vm755_vm9, %v751_v22, %v759_v43  ;;  %v762_v50 = vsel %vm754_vm10, %v750_v23, %v758_v44  ;;  %v1929_v13 = vpop.eup %1502 }
 0x347   :  { %v771_v25 = vsel %vm151_vm1, %v1867_v34, -inf  ;;  %v768_v47 = vsel %vm151_vm1, %v1871_v40, -inf  ;;  %v1891_v3 = vsel %vm1785_vm13, %v763_v49, -1e+30  ;;  %v1895_v4 = vsel %vm1781_vm12, %v762_v50, -1e+30 }
 0x348   :  { %772 = vmax.xlane.f32.xlu0 %v771_v25  ;;  %769 = vmax.xlane.f32.xlu1 %v768_v47  ;;  %v777_v54 = vsel %vm151_vm1, %v1891_v3, -inf  ;;  %v774_v55 = vsel %vm151_vm1, %v1895_v4, -inf  ;;  %v1907_v57 = vsel %vm1781_vm12, %v1019_v36, -1e+30  ;;  %v281_v14 = vsel %vm151_vm1, %v1927_v7, 0.0  ;;  %v1933_v31 = vpop.eup %1504 }
 0x349   :  { %v1031_v38 = vsel %vm151_vm1, %v1907_v57, -inf  ;;  %v287_v20 = vsel %vm151_vm1, %v1933_v31, 0.0  ;;  %v278_v19 = vsel %vm151_vm1, %v1929_v13, 0.0  ;;  %vm1230_vm6 = vcmask 523264  }
 0x34a   :  { %vm1235_vm7 = vcmask 785408  }
 0x34c   :  { %1029 = vmax.xlane.f32.xlu0 %v1028_v53  ;;  %1026 = vmax.xlane.f32.xlu1 %v1025_v30 }
 0x350   :  { %778 = vmax.xlane.f32.xlu0 %v777_v54  ;;  %775 = vmax.xlane.f32.xlu1 %v774_v55 }
 0x354   :  { %1035 = vmax.xlane.f32.xlu0 %v1034_v58  ;;  %1032 = vmax.xlane.f32.xlu1 %v1031_v38 }
 0x365   :  { %1481 = vrot.lane.b32.xlu1 %v1659_v11, %s1597_s2 }
 0x369   :  { %1486 = vrot.lane.b32.xlu1 %v1659_v11, %s1598_s12  ;;  %v274_v11 = vmul.f32 1.442695, %v268_v1 }
 0x36a   :  { %1476 = vrot.lane.b32.xlu0 %v1669_v21, %s1596_s10 }
 0x36b   :  { %1506 = vpow2.f32 %v274_v11 }
 0x375   :  { %v1939_v45 = vpop.eup %1506 }
 0x376   :  { %v284_v46 = vsel %vm151_vm1, %v1939_v45, 0.0 }
 0x389   :  { %282 = vadd.xlane.f32.xlu0 %v281_v14 }
 0x38d   :  { %288 = vadd.xlane.f32.xlu0 %v287_v20  ;;  %279 = vadd.xlane.f32.xlu1 %v278_v19 }
 0x391   :  { %285 = vadd.xlane.f32.xlu1 %v284_v46 }
 0x3c5   :  { %v509_v51 = vpop.xlane.xlu1 %508  ;;  %v512_v63 = vpop.xlane.xlu0 %511 }
 0x3c6   :  { %v519_v8 = vsub.f32 %v1839_v33, %v509_v51  ;;  %v520_v62 = vsub.f32 %v1835_v59, %v512_v63 }
 0x3c8   :  { %v523_v12 = vmul.f32 1.442695, %v519_v8  ;;  %v525_v15 = vmul.f32 1.442695, %v520_v62 }
 0x3c9   :  { %v515_v16 = vpop.xlane.xlu1 %514  ;;  %v518_v17 = vpop.xlane.xlu0 %517 }
 0x3ca   :  { %1508 = vpow2.f32 %v523_v12  ;;  %v521_v18 = vsub.f32 %v1852_v5, %v515_v16  ;;  %v522_v22 = vsub.f32 %v1848_v2, %v518_v17 }
 0x3cb   :  { %1510 = vpow2.f32 %v525_v15 }
 0x3cc   :  { %v527_v23 = vmul.f32 1.442695, %v521_v18  ;;  %v529_v24 = vmul.f32 1.442695, %v522_v22 }
 0x3ce   :  { %1512 = vpow2.f32 %v527_v23 }
 0x3cf   :  { %1514 = vpow2.f32 %v529_v24 }
 0x3d4   :  { %v1947_v26 = vpop.eup %1508 }
 0x3d5   :  { %v1949_v27 = vpop.eup %1510  ;;  %v770_v33 = vpop.xlane.xlu1 %769  ;;  %v531_v35 = vsel %vm151_vm1, %v1947_v26, 0.0 }
 0x3d6   :  { %v773_v59 = vpop.xlane.xlu0 %772  ;;  %v780_v28 = vsub.f32 %v1871_v40, %v770_v33  ;;  %532 = vadd.xlane.f32.xlu1 %v531_v35  ;;  %v534_v2 = vsel %vm151_vm1, %v1949_v27, 0.0 }
 0x3d7   :  { %v781_v5 = vsub.f32 %v1867_v34, %v773_v59  ;;  %535 = vadd.xlane.f32.xlu0 %v534_v2 }
 0x3d8   :  { %v1957_v48 = vpop.eup %1512  ;;  %v784_v29 = vmul.f32 1.442695, %v780_v28 }
 0x3d9   :  { %v786_v39 = vmul.f32 1.442695, %v781_v5  ;;  %v1959_v43 = vpop.eup %1514  ;;  %v1027_v44 = vpop.xlane.xlu1 %1026  ;;  %v537_v47 = vsel %vm151_vm1, %v1957_v48, 0.0 }
 0x3da   :  { %v1030_v25 = vpop.xlane.xlu0 %1029  ;;  %1516 = vpow2.f32 %v784_v29  ;;  %v1037_v40 = vsub.f32 %v1883_v42, %v1027_v44  ;;  %538 = vadd.xlane.f32.xlu1 %v537_v47  ;;  %v540_v49 = vsel %vm151_vm1, %v1959_v43, 0.0 }
 0x3db   :  { %v1038_v34 = vsub.f32 %v1879_v41, %v1030_v25  ;;  %1518 = vpow2.f32 %v786_v39  ;;  %541 = vadd.xlane.f32.xlu0 %v540_v49 }
 0x3dc   :  { %v1041_v50 = vmul.f32 1.442695, %v1037_v40 }
 0x3dd   :  { %v1043_v52 = vmul.f32 1.442695, %v1038_v34  ;;  %v776_v32 = vpop.xlane.xlu1 %775 }
 0x3de   :  { %v779_v53 = vpop.xlane.xlu0 %778  ;;  %1520 = vpow2.f32 %v1041_v50  ;;  %v782_v30 = vsub.f32 %v1895_v4, %v776_v32 }
 0x3df   :  { %v783_v37 = vsub.f32 %v1891_v3, %v779_v53  ;;  %1522 = vpow2.f32 %v1043_v52 }
 0x3e0   :  { %v788_v36 = vmul.f32 1.442695, %v782_v30 }
 0x3e1   :  { %v790_v42 = vmul.f32 1.442695, %v783_v37  ;;  %v1033_v54 = vpop.xlane.xlu1 %1032 }
 0x3e2   :  { %v1036_v41 = vpop.xlane.xlu0 %1035  ;;  %1524 = vpow2.f32 %v788_v36  ;;  %v1039_v55 = vsub.f32 %v1907_v57, %v1033_v54 }
 0x3e3   :  { %v1040_v58 = vsub.f32 %v1903_v56, %v1036_v41  ;;  %1526 = vpow2.f32 %v790_v42 }
 0x3e4   :  { %v1971_v38 = vpop.eup %1516  ;;  %v1045_v9 = vmul.f32 1.442695, %v1039_v55 }
 0x3e5   :  { %v1047_v10 = vmul.f32 1.442695, %v1040_v58  ;;  %v1973_v60 = vpop.eup %1518  ;;  %v1482_v4 = vpop.permute.xlu1 %1481  ;;  %v792_v3 = vsel %vm151_vm1, %v1971_v38, 0.0 }
 0x3e6   :  { %v1477_v61 = vpop.permute.xlu0 %1476  ;;  %1528 = vpow2.f32 %v1045_v9  ;;  %v1484_v0 = vunpack.i.h.bf16 %v1482_v4  ;;  %v1483_v1 = vunpack.i.l.bf16 %v1482_v4  ;;  %793 = vadd.xlane.f32.xlu1 %v792_v3  ;;  %v795_v56 = vsel %vm151_vm1, %v1973_v60, 0.0 }
 0x3e7   :  { %v1479_v6 = vunpack.i.h.bf16 %v1477_v61  ;;  %1530 = vpow2.f32 %v1047_v10  ;;  %v1478_v57 = vunpack.i.l.bf16 %v1477_v61  ;;  %796 = vadd.xlane.f32.xlu0 %v795_v56 }
 0x3e8   :  { %v1979_v11 = vpop.eup %1520  ;;  %v1446_v14 = vpack.c.bf16 %v1484_v0, %v1483_v1 }
 0x3e9   :  { %v1981_v20 = vpop.eup %1522  ;;  %v1442_v19 = vpack.c.bf16 %v1479_v6, %v1478_v57  ;;  %v1487_v46 = vpop.permute.xlu1 %1486  ;;  %v1049_v51 = vsel %vm151_vm1, %v1979_v11, 0.0 }
 0x3ea   :  { %v1489_v63 = vunpack.i.h.bf16 %v1487_v46  ;;  %v1488_v8 = vunpack.i.l.bf16 %v1487_v46  ;;  %1050 = vadd.xlane.f32.xlu1 %v1049_v51  ;;  %1447 = vmatprep.subr.bf16.mxu1 %v1446_v14  ;;  %v1052_v62 = vsel %vm151_vm1, %v1981_v20, 0.0 }
 0x3eb   :  { %1443 = vmatprep.subr.bf16.mxu0 %v1442_v19  ;;  %1053 = vadd.xlane.f32.xlu0 %v1052_v62 }
 0x3ec   :  { %v1987_v12 = vpop.eup %1524  ;;  %v1454_v15 = vpack.c.bf16 %v1489_v63, %v1488_v8  ;;  %1445 = vmatpush3.bf16.msra.mxu0 %v1442_v19 }
 0x3ed   :  { %v1989_v16 = vpop.eup %1526  ;;  %v798_v17 = vsel %vm151_vm1, %v1987_v12, 0.0 }
 0x3ee   :  { %799 = vadd.xlane.f32.xlu1 %v798_v17  ;;  %v801_v18 = vsel %vm151_vm1, %v1989_v16, 0.0  ;;  %1455 = vmatprep.subr.bf16.mxu0 %v1454_v15 }
 0x3ef   :  { %802 = vadd.xlane.f32.xlu0 %v801_v18 }
 0x3f0   :  { %v1995_v22 = vpop.eup %1528 }
 0x3f1   :  { %v1997_v23 = vpop.eup %1530  ;;  %v1055_v24 = vsel %vm151_vm1, %v1995_v22, 0.0 }
 0x3f2   :  { %1056 = vadd.xlane.f32.xlu1 %v1055_v24  ;;  %v1058_v33 = vsel %vm151_vm1, %v1997_v23, 0.0 }
 0x3f3   :  { %1059 = vadd.xlane.f32.xlu0 %v1058_v33 }
 0x403   :  { %1496 = vrot.lane.b32.xlu1 %v1669_v21, %s1598_s12 }
 0x409   :  { %1491 = vrot.lane.b32.xlu0 %v1669_v21, %s1597_s2 }
 0x416   :  { %v283_v59 = vpop.xlane.xlu0 %282 }
 0x417   :  { %1532 = vrcp.f32 %v283_v59 }
 0x41a   :  { %v280_v35 = vpop.xlane.xlu1 %279  ;;  %v289_v28 = vpop.xlane.xlu0 %288 }
 0x41b   :  { %1534 = vrcp.f32 %v280_v35 }
 0x41c   :  { %1536 = vrcp.f32 %v289_v28 }
 0x41e   :  { %v286_v5 = vpop.xlane.xlu1 %285 }
 0x41f   :  { %1538 = vrcp.f32 %v286_v5 }
 0x421   :  { %v1533_v2 = vpop.eup %1532 }
 0x422   :  { %v295_v44 = vmul.f32 %v1533_v2, %v1927_v7 }
 0x425   :  { %v1535_v29 = vpop.eup %1534 }
 0x426   :  { %v294_v39 = vmul.f32 %v1535_v29, %v1929_v13  ;;  %v1537_v25 = vpop.eup %1536 }
 0x427   :  { %v297_v40 = vmul.f32 %v1537_v25, %v1933_v31 }
 0x428   :  { %1378 = vmatprep.mubr.msk.f32.mxu1 %vm151_vm1, %v294_v39 }
 0x429   :  { %v1539_v47 = vpop.eup %1538  ;;  %1379 = vmatmul.mubr.msk.f32.vlgmr.msra.gmra.mrb[0].mxu1 %vm151_vm1, %v295_v44 }
 0x42a   :  { %1449 = vmatpush3.bf16.msra.mxu1 %v1446_v14  ;;  %v296_v21 = vmul.f32 %v1539_v47, %v1939_v45 }
 0x42c   :  { %1381 = vmatprep.mubr.msk.f32.mxu1 %vm151_vm1, %v296_v21 }
 0x42d   :  { %1382 = vmatmul.mubr.msk.f32.gmra.mrb[2].mxu1 %vm151_vm1, %v297_v40 }
 0x463   :  { %v533_v34 = vpop.xlane.xlu1 %532 }
 0x464   :  { %1540 = vrcp.f32 %v533_v34  ;;  %v536_v13 = vpop.xlane.xlu0 %535 }
 0x465   :  { %1542 = vrcp.f32 %v536_v13 }
 0x467   :  { %v539_v7 = vpop.xlane.xlu1 %538 }
 0x468   :  { %1544 = vrcp.f32 %v539_v7  ;;  %v542_v49 = vpop.xlane.xlu0 %541 }
 0x469   :  { %1546 = vrcp.f32 %v542_v49 }
 0x46e   :  { %v1541_v50 = vpop.eup %1540 }
 0x46f   :  { %v1543_v52 = vpop.eup %1542  ;;  %v547_v32 = vmul.f32 %v1541_v50, %v1947_v26 }
 0x470   :  { %v548_v45 = vmul.f32 %v1543_v52, %v1949_v27  ;;  %v1317_v52 = vld [vmem:[%s2082_s4] ss:$0 sm:$0xff]  ;;  %s1600_s4 = smov [#allocation2]  }
 0x471   :  { %1392 = vmatprep.mubr.msk.f32.mxu0 %vm151_vm1, %v547_v32  ;;  %s1284_s21 = sshll.u32 %s1600_s4, 4  ;;  %s1285_s21 = int_to_ptr.vmem [resolvable:$true] %s1284_s21 }
 0x472   :  { %v1545_v31 = vpop.eup %1544  ;;  %1393 = vmatmul.mubr.msk.f32.vlgmr.msra.gmra.mrb[4].mxu0 %vm151_vm1, %v548_v45  ;;  %s1572_s22 = scalar_lea.vmem %s1285_s21, 512  ;;  %p1577_p1 = scmp.lt.s32.totalorder %s1285_s21, %s1285_s21 }
 0x473   :  { %v1547_v53 = vpop.eup %1546  ;;  %1457 = vmatpush3.bf16.msra.mxu0 %v1454_v15  ;;  %v794_v30 = vpop.xlane.xlu1 %793  ;;  %v549_v37 = vmul.f32 %v1545_v31, %v1957_v48  ;;  %p1573_p0 = scmp.ne.s32.totalorder %s1285_s21, %s1572_s22  ;;  %p1578_p2 = scmp.lt.s32.totalorder %s1572_s22, %s1572_s22 }
 0x474   :  { %1548 = vrcp.f32 %v794_v30  ;;  %v550_v36 = vmul.f32 %v1547_v53, %v1959_v43  ;;  %v797_v42 = vpop.xlane.xlu0 %796 }
 0x475   :  { %1395 = vmatprep.mubr.msk.f32.mxu0 %vm151_vm1, %v549_v37  ;;  %p1579_p3 = por %p1578_p2, %p1577_p1 }
 0x476   :  { %1396 = vmatmul.mubr.msk.f32.gmra.mrb[6].mxu0 %vm151_vm1, %v550_v36 }
 0x477   :  { %v1051_v26 = vpop.xlane.xlu1 %1050  ;;  %p1580_p4 = pnand %p1579_p3, %p1573_p0 }
 0x478   :  { %1550 = vrcp.f32 %v1051_v26  ;;  %v1054_v27 = vpop.xlane.xlu0 %1053 }
 0x479   :  { %1552 = vrcp.f32 %v1054_v27 }
 0x47a   :  { %1554 = vrcp.f32 %v797_v42 }
 0x47b   :  { %v800_v54 = vpop.xlane.xlu1 %799 }
 0x47c   :  { %v803_v41 = vpop.xlane.xlu0 %802  ;;  %1556 = vrcp.f32 %v800_v54 }
 0x47e   :  { %v1549_v55 = vpop.eup %1548 }
 0x47f   :  { %v1057_v58 = vpop.xlane.xlu1 %1056  ;;  %v808_v48 = vmul.f32 %v1549_v55, %v1971_v38 }
 0x480   :  { %1558 = vrcp.f32 %v1057_v58  ;;  %v1060_v9 = vpop.xlane.xlu0 %1059 }
 0x481   :  { %1406 = vmatprep.mubr.msk.f32.mxu1 %vm151_vm1, %v808_v48  ;;  %1560 = vrcp.f32 %v1060_v9 }
 0x482   :  { %v1551_v43 = vpop.eup %1550  ;;  %1562 = vrcp.f32 %v803_v41 }
 0x483   :  { %v1497_v10 = vpop.permute.xlu1 %1496  ;;  %v1065_v4 = vmul.f32 %v1551_v43, %v1979_v11  ;;  %v1553_v56 = vpop.eup %1552 }
 0x484   :  { %v1499_v61 = vunpack.i.h.bf16 %v1497_v10  ;;  %v1498_v3 = vunpack.i.l.bf16 %v1497_v10  ;;  %v1492_v0 = vpop.permute.xlu0 %1491  ;;  %v1555_v38 = vpop.eup %1554  ;;  %v1066_v51 = vmul.f32 %v1553_v56, %v1981_v20 }
 0x485   :  { %1420 = vmatprep.mubr.msk.f32.mxu0 %vm151_vm1, %v1065_v4  ;;  %v1494_v6 = vunpack.i.h.bf16 %v1492_v0  ;;  %v1493_v57 = vunpack.i.l.bf16 %v1492_v0  ;;  %v809_v8 = vmul.f32 %v1555_v38, %v1973_v60 }
 0x486   :  { %v1458_v1 = vpack.c.bf16 %v1499_v61, %v1498_v3  ;;  %v1557_v19 = vpop.eup %1556 }
 0x487   :  { %v1450_v14 = vpack.c.bf16 %v1494_v6, %v1493_v57  ;;  %v810_v15 = vmul.f32 %v1557_v19, %v1987_v12 }
 0x488   :  { %1459 = vmatprep.subr.bf16.mxu0 %v1458_v1 }
 0x489   :  { %1461 = vmatpush3.bf16.msra.mxu0 %v1458_v1  ;;  %1451 = vmatprep.subr.bf16.mxu1 %v1450_v14 }
 0x48a   :  { %v1559_v46 = vpop.eup %1558  ;;  %1453 = vmatpush3.bf16.msra.mxu1 %v1450_v14 }
 0x48b   :  { %v1067_v11 = vmul.f32 %v1559_v46, %v1995_v22  ;;  %v1561_v63 = vpop.eup %1560 }
 0x48c   :  { %1421 = vmatmul.mubr.msk.f32.vlgmr.msra.gmra.mrb[8].mxu0 %vm151_vm1, %v1066_v51  ;;  %v1563_v62 = vpop.eup %1562  ;;  %v1068_v17 = vmul.f32 %v1561_v63, %v1997_v23 }
 0x48d   :  { %1423 = vmatprep.mubr.msk.f32.mxu0 %vm151_vm1, %v1067_v11  ;;  %1407 = vmatmul.mubr.msk.f32.vlgmr.msra.gmra.mrb[4].mxu1 %vm151_vm1, %v809_v8  ;;  %v811_v20 = vmul.f32 %v1563_v62, %v1989_v16 }
 0x48e   :  { %1409 = vmatprep.mubr.msk.f32.mxu1 %vm151_vm1, %v810_v15 }
 0x490   :  { %1424 = vmatmul.mubr.msk.f32.gmra.mrb[10].mxu0 %vm151_vm1, %v1068_v17 }
 0x491   :  { %1410 = vmatmul.mubr.msk.f32.gmra.mrb[6].mxu1 %vm151_vm1, %v811_v20 }
 0x4fc   :  { %v1380_v60 = vpop.f32.mrb[0].mxu1 }
 0x4fd   :  { %v376_v18 = vpop.f32.mrb[1].mxu1 }
 0x500   :  { %v1383_v22 = vpop.f32.mrb[2].mxu1 }
 0x501   :  { %v386_v24 = vpop.f32.mrb[3].mxu1 }
 0x545   :  { %v1394_v33 = vpop.f32.mrb[4].mxu0 }
 0x546   :  { %1184 = vrot.lane.b32.xlu1 %v1394_v33, %s1598_s12  ;;  %v645_v12 = vpop.f32.mrb[5].mxu0 }
 0x547   :  { %1182 = vrot.lane.b32.xlu0 %v645_v12, %s1598_s12 }
 0x549   :  { %v1397_v59 = vpop.f32.mrb[6].mxu0 }
 0x54a   :  { %v655_v23 = vpop.f32.mrb[7].mxu0 }
 0x55f   :  { %v1422_v35 = vpop.f32.mrb[8].mxu0 }
 0x560   :  { %v1159_v28 = vpop.f32.mrb[9].mxu0  ;;  %v1408_v5 = vpop.f32.mrb[4].mxu1 }
 0x561   :  { %v902_v16 = vpop.f32.mrb[5].mxu1  ;;  %1200 = vrot.lane.b32.xlu1 %v1408_v5, %s1597_s2 }
 0x562   :  { %1198 = vrot.lane.b32.xlu0 %v902_v16, %s1597_s2 }
 0x563   :  { %v1425_v2 = vpop.f32.mrb[10].mxu0 }
 0x564   :  { %v1169_v29 = vpop.f32.mrb[11].mxu0  ;;  %v1411_v39 = vpop.f32.mrb[6].mxu1 }
 0x565   :  { %v912_v44 = vpop.f32.mrb[7].mxu1  ;;  %1188 = vrot.lane.b32.xlu1 %v1397_v59, %s1598_s12 }
 0x566   :  { %1186 = vrot.lane.b32.xlu0 %v655_v23, %s1598_s12 }
 0x569   :  { %1204 = vrot.lane.b32.xlu1 %v1411_v39, %s1597_s2 }
 0x56a   :  { %1202 = vrot.lane.b32.xlu0 %v912_v44, %s1597_s2 }
 0x56d   :  { %1216 = vrot.lane.b32.xlu1 %v1422_v35, %s1596_s10 }
 0x56e   :  { %1214 = vrot.lane.b32.xlu0 %v1159_v28, %s1596_s10 }
 0x571   :  { %1220 = vrot.lane.b32.xlu1 %v1425_v2, %s1596_s10 }
 0x572   :  { %1218 = vrot.lane.b32.xlu0 %v1169_v29, %s1596_s10 }
 0x5b8   :  { %v1185_v25 = vpop.permute.xlu1 %1184 }
 0x5b9   :  { %v1183_v47 = vpop.permute.xlu0 %1182  ;;  %v1227_v50 = vsel %vm151_vm1, %v1380_v60, %v1185_v25 }
 0x5ba   :  { %v1226_v32 = vsel %vm151_vm1, %v376_v18, %v1183_v47 }
 0x5d3   :  { %v1201_v21 = vpop.permute.xlu1 %1200 }
 0x5d4   :  { %v1199_v40 = vpop.permute.xlu0 %1198  ;;  %v1232_v45 = vsel %vm1230_vm6, %v1227_v50, %v1201_v21 }
 0x5d5   :  { %v1231_v53 = vsel %vm1230_vm6, %v1226_v32, %v1199_v40 }
 0x5d7   :  { %v1189_v34 = vpop.permute.xlu1 %1188 }
 0x5d8   :  { %v1187_v13 = vpop.permute.xlu0 %1186  ;;  %v1229_v26 = vsel %vm151_vm1, %v1383_v22, %v1189_v34 }
 0x5d9   :  { %v1228_v54 = vsel %vm151_vm1, %v386_v24, %v1187_v13 }
 0x5db   :  { %v1205_v7 = vpop.permute.xlu1 %1204 }
 0x5dc   :  { %v1203_v49 = vpop.permute.xlu0 %1202  ;;  %v1234_v41 = vsel %vm1230_vm6, %v1229_v26, %v1205_v7 }
 0x5dd   :  { %v1233_v48 = vsel %vm1230_vm6, %v1228_v54, %v1203_v49 }
 0x5df   :  { %v1217_v31 = vpop.permute.xlu1 %1216 }
 0x5e0   :  { %v1237_v30 = vsel %vm1235_vm7, %v1232_v45, %v1217_v31  ;;  %v1215_v37 = vpop.permute.xlu0 %1214 }
 0x5e1   :  { %v1248_v36 = vadd.f32 %v1317_v52, %v1237_v30  ;;  %v1236_v42 = vsel %vm1235_vm7, %v1231_v53, %v1215_v37 }
 0x5e2   :  { %v1247_v27 = vadd.f32 %v1317_v52, %v1236_v42 }
 0x5e3   :  { %v1256_v55 = vmin.f32 %v1248_v36, 0.0  ;;  %v1221_v58 = vpop.permute.xlu1 %1220  ;;  %vm1252_vm1 = vcmp.gt.f32.partialorder %v1248_v36, 0.0 }
 0x5e4   :  { %v1255_v9 = vmin.f32 %v1247_v27, 0.0  ;;  %v1239_v43 = vsel %vm1235_vm7, %v1234_v41, %v1221_v58  ;;  %v1219_v10 = vpop.permute.xlu0 %1218  ;;  %vm1251_vm12 = vcmp.gt.f32.partialorder %v1247_v27, 0.0 }
 0x5e5   :  { %v1261_v4 = vmul.f32 1.442695, %v1256_v55  ;;  %v1250_v61 = vadd.f32 %v1317_v52, %v1239_v43  ;;  %v1238_v3 = vsel %vm1235_vm7, %v1233_v48, %v1219_v10 }
 0x5e6   :  { %v1259_v0 = vmul.f32 1.442695, %v1255_v9  ;;  %v1249_v1 = vadd.f32 %v1317_v52, %v1238_v3 }
 0x5e7   :  { %1564 = vpow2.f32 %v1261_v4  ;;  %v1258_v6 = vmin.f32 %v1250_v61, 0.0  ;;  %vm1254_vm13 = vcmp.gt.f32.partialorder %v1250_v61, 0.0 }
 0x5e8   :  { %1566 = vpow2.f32 %v1259_v0  ;;  %v1257_v57 = vmin.f32 %v1249_v1, 0.0  ;;  %vm1253_vm15 = vcmp.gt.f32.partialorder %v1249_v1, 0.0 }
 0x5e9   :  { %v1265_v56 = vmul.f32 1.442695, %v1258_v6 }
 0x5ea   :  { %v1263_v38 = vmul.f32 1.442695, %v1257_v57 }
 0x5eb   :  { %1568 = vpow2.f32 %v1265_v56 }
 0x5ec   :  { %1570 = vpow2.f32 %v1263_v38 }
 0x5f1   :  { %v1565_v14 = vpop.eup %1564 }
 0x5f2   :  { %v1567_v19 = vpop.eup %1566  ;;  %v1319_v46 = vadd.f32 -1.0, %v1565_v14 }
 0x5f3   :  { %v1318_v51 = vadd.f32 -1.0, %v1567_v19 }
 0x5f4   :  { %v1272_v11 = vsel %vm1252_vm1, %v1248_v36, %v1319_v46 }
 0x5f5   :  { %v1569_v63 = vpop.eup %1568  ;;  %1276 = vst [vmem:[#allocation2 + $0x8] sm:$0xff] %v1272_v11  ;;  %v1271_v8 = vsel %vm1251_vm12, %v1247_v27, %v1318_v51 }
 0x5f6   :  { %v1571_v62 = vpop.eup %1570  ;;  %1275 = vst [vmem:[#allocation2] sm:$0xff] %v1271_v8  ;;  %v1321_v15 = vadd.f32 -1.0, %v1569_v63 }
 0x5f7   :  { %v1320_v17 = vadd.f32 -1.0, %v1571_v62 }
 0x5f8   :  { %v1274_v20 = vsel %vm1254_vm13, %v1250_v61, %v1321_v15 }
 0x5f9   :  { %1278 = vst [vmem:[#allocation2 + $0x18] sm:$0xff] %v1274_v20  ;;  %v1273_v60 = vsel %vm1253_vm15, %v1249_v1, %v1320_v17 }
 0x5fa   :  { %1277 = vst [vmem:[#allocation2 + $0x10] sm:$0xff] %v1273_v60 }
 0x5fb   :  { %1583 = shalt.err (!%p1580_p4)
}
 0x5fc   :  { %s1584_s25 = scalar_lea.hbm %s2084_s6, 512 }
 0x5fd   :  { %p1585_p5 = scmp.ne.s32.totalorder %s2084_s6, %s1584_s25  ;;  %p1588_p6 = scmp.lt.u32.totalorder %s1584_s25, %s2084_s6 }
 0x5ff   :  { %p1590_p7 = pnand %p1588_p6, %p1585_p5 }
 0x601   :  { %1593 = shalt.err (!%p1590_p7)
}
 0x602   :  { %s1601_s30 = smov 128   ;;  %s1602_s1 = smov 8  }
 0x603   :  { %1290 = dma.vmem_to_hbm [thread:$0]  %s1285_s21, 512, %s2084_s6, [#allocation3], %s1601_s30, %s1601_s30, %s1602_s1  }
 0x604   :  { %1594 = dma.done.wait [#allocation3], 512  }
 0x605   :  { %1595 = vsyncadd [#allocation3], 4294966784 }
 0x606   :  { %1294 = vsyncpa [#allocation3], 1 }

</bundles_post_ra>
